<compile_context>
chip_gen: v7x
topology: tpu7x:2x2x1
jax: 0.10.0
libtpu: 0.0.40
codegen_flags: <defaults>
</compile_context>

<pallas_src>
import jax
import jax.numpy as jnp
from jax import lax
from jax.experimental import pallas as pl
from jax.experimental.pallas import tpu as pltpu


def _round_up(x: int, m: int) -> int:
    return ((x + m - 1) // m) * m


def _conv1x1_kernel(x_ref, w_ref, b_ref, o_ref):
    # x_ref: (t_hw, C)   w_ref: (L, C)   b_ref: (L, 1) f32
    # o_ref: (L, t_hw) f32 -- pixel dim on the 128-lane axis (lane-dense stores).
    acc = lax.dot_general(
        w_ref[...],
        x_ref[...],
        dimension_numbers=(((1,), (1,)), ((), ())),  # contract C: (L,C)x(t,C)->(L,t)
        preferred_element_type=jnp.float32,
    )
    o_ref[...] = (acc + b_ref[...]).astype(o_ref.dtype)


def linear_classifier_forward(embeddings, weight, bias, *, tokenH, tokenW,
                              tile_pixels=8192):
    """embeddings: (B, H*W, C) -> (B, num_labels, H, W) float32.

    weight: (num_labels, C)  (PyTorch Conv2d 1x1 weight squeezed over kernel dims)
    bias:   (num_labels,)
    """
    C = embeddings.shape[-1]
    L = weight.shape[0]
    HW = tokenH * tokenW

    # reshape(-1, H, W, C) exactly like PyTorch, kept flattened as (B, H*W, C).
    # This is a metadata-only reshape: no cast / pad / copy before the kernel.
    x = embeddings.reshape(-1, HW, C)
    B = x.shape[0]

    w = weight.reshape(L, C).astype(x.dtype)        # tiny, resident in VMEM
    b = bias.reshape(L, 1).astype(jnp.float32)      # broadcast over the lane axis

    # Pixel-tile selection, budgeting VMEM with the lane-padding factor:
    # per pixel row, double-buffered:  x: 2*round_up(C,128)*4 B,  out: 2*round_up(L,8)*4 B.
    # ~12 MiB budget stays under v5e's 16 MiB scoped-VMEM default (and well under
    # v6e / v7x defaults), so no vmem_limit_bytes override is required.
    c_pad = _round_up(C, 128)
    l_pad = _round_up(L, 8)
    budget_bytes = 12 * 1024 * 1024
    cap = max(budget_bytes // (8 * (c_pad + l_pad)), 128)
    t_hw = min(max(int(tile_pixels), 128), cap)
    if t_hw >= HW:
        t_hw = HW                                   # one full-row block (legal for any HW)
    else:
        t_hw = max((t_hw // 128) * 128, 128)        # lane-aligned tile; ragged tail
                                                    # handled by the cdiv grid + masking

    grid = (B, pl.cdiv(HW, t_hw))

    out = pl.pallas_call(
        _conv1x1_kernel,
        out_shape=jax.ShapeDtypeStruct((B, L, HW), jnp.float32),
        grid_spec=pltpu.PrefetchScalarGridSpec(
            num_scalar_prefetch=0,
            grid=grid,
            in_specs=[
                # Batch dim squeezed out of the kernel view.
                pl.BlockSpec((None, t_hw, C), lambda bi, j: (bi, j, 0)),
                # Weight / bias: tiny blocks with constant index_map (fetched once).
                pl.BlockSpec((L, C), lambda bi, j: (0, 0)),
                pl.BlockSpec((L, 1), lambda bi, j: (0, 0)),
            ],
            out_specs=pl.BlockSpec((None, L, t_hw), lambda bi, j: (bi, 0, j)),
        ),
        compiler_params=pltpu.CompilerParams(
            dimension_semantics=("parallel", "parallel"),
        ),
    )(x, w, b)

    # (B, L, H*W) -> (B, L, H, W): contiguous reshape, no transpose / extra HBM pass.
    return out.reshape(B, L, tokenH, tokenW)


def _reference(embeddings, weight, bias, *, tokenH, tokenW):
    C = embeddings.shape[-1]
    x = embeddings.reshape(-1, tokenH, tokenW, C).astype(jnp.float32)
    w = weight.astype(jnp.float32)
    return jnp.einsum("bhwc,lc->blhw", x, w) + bias.astype(jnp.float32)[None, :, None, None]


if __name__ == "__main__":
    key = jax.random.PRNGKey(0)

    def make_case(k, B, tokenH, tokenW, C, L):
        k_x, k_w, k_b = jax.random.split(k, 3)
        x = jax.random.normal(k_x, (B, tokenH * tokenW, C), dtype=jnp.float32)
        bound = 1.0 / (C ** 0.5)
        w = jax.random.uniform(k_w, (L, C), minval=-bound, maxval=bound, dtype=jnp.float32)
        b = jax.random.uniform(k_b, (L,), minval=-bound, maxval=bound, dtype=jnp.float32)
        return x, w, b

    k1, k2 = jax.random.split(key)

    # Case 1: B=2, 16x16 tokens, C=32, num_labels=1 (the module's default head size).
    x, w, b = make_case(k1, B=2, tokenH=16, tokenW=16, C=32, L=1)
    out = jax.block_until_ready(linear_classifier_forward(x, w, b, tokenH=16, tokenW=16))
    ref = _reference(x, w, b, tokenH=16, tokenW=16)
    assert out.shape == (2, 1, 16, 16), out.shape
    assert jnp.allclose(out, ref, atol=2e-2, rtol=2e-2), float(jnp.max(jnp.abs(out - ref)))

    # Case 2: non-square token grid (pixel count not a multiple of 128) and L>1.
    x2, w2, b2 = make_case(k2, B=2, tokenH=16, tokenW=12, C=32, L=3)
    out2 = jax.block_until_ready(linear_classifier_forward(x2, w2, b2, tokenH=16, tokenW=12))
    ref2 = _reference(x2, w2, b2, tokenH=16, tokenW=12)
    assert out2.shape == (2, 3, 16, 12), out2.shape
    assert jnp.allclose(out2, ref2, atol=2e-2, rtol=2e-2), float(jnp.max(jnp.abs(out2 - ref2)))

    # Case 3: pixel axis larger than the tile (exercises the cdiv grid, the
    # lane-aligned tiling, and the masked ragged tail block).
    x3, w3, b3 = make_case(k1, B=2, tokenH=64, tokenW=64, C=32, L=2)
    out3 = jax.block_until_ready(
        linear_classifier_forward(x3, w3, b3, tokenH=64, tokenW=64, tile_pixels=1536))
    ref3 = _reference(x3, w3, b3, tokenH=64, tokenW=64)
    assert out3.shape == (2, 2, 64, 64), out3.shape
    assert jnp.allclose(out3, ref3, atol=2e-2, rtol=2e-2), float(jnp.max(jnp.abs(out3 - ref3)))

    print("KERNEL_OK")
</pallas_src>

<mosaic_0001>
module attributes {stable_mosaic.version = 11 : i64} {
  func.func @_conv1x1_kernel(%arg0: i32, %arg1: i32, %arg2: memref<1x256x32xf32, #tpu.memory_space<vmem>>, %arg3: memref<1x32xf32, #tpu.memory_space<vmem>>, %arg4: memref<1x1xf32, #tpu.memory_space<vmem>>, %arg5: memref<1x1x256xf32, #tpu.memory_space<vmem>>) attributes {dimension_semantics = [#tpu.dimension_semantics<parallel>, #tpu.dimension_semantics<parallel>], iteration_bounds = array<i64: 2, 1>, scalar_prefetch = 0 : i64, scratch_operands = 0 : i64, tpu.core_type = #tpu.core_type<tc>, window_params = [{transform_indices = @transform_0, window_bounds = array<i64: 1, 256, 32>}, {pipeline_mode = #tpu.pipeline_mode<synchronous>, transform_indices = @transform_1, window_bounds = array<i64: 1, 32>}, {pipeline_mode = #tpu.pipeline_mode<synchronous>, transform_indices = @transform_2, window_bounds = array<i64: 1, 1>}, {transform_indices = @transform_3, window_bounds = array<i64: 1, 1, 256>}]} {
    %c0 = arith.constant 0 : index
    %c0_0 = arith.constant 0 : index
    %0 = vector.load %arg3[%c0, %c0_0] : memref<1x32xf32, #tpu.memory_space<vmem>>, vector<1x32xf32>
    %c0_1 = arith.constant 0 : index
    %c0_2 = arith.constant 0 : index
    %c0_3 = arith.constant 0 : index
    %1 = vector.load %arg2[%c0_1, %c0_2, %c0_3] : memref<1x256x32xf32, #tpu.memory_space<vmem>>, vector<1x256x32xf32>
    %2 = vector.shape_cast %1 : vector<1x256x32xf32> to vector<256x32xf32>
    %cst = arith.constant dense<0.000000e+00> : vector<1x256xf32>
    %3 = tpu.matmul %0, %2, %cst {dimension_numbers = #tpu.dot_dimension_numbers<[1], [1], [0], [0], [0, 0, 1, 0], [], []>} : vector<1x32xf32>, vector<256x32xf32>, vector<1x256xf32> -> vector<1x256xf32>
    %c0_4 = arith.constant 0 : index
    %c0_5 = arith.constant 0 : index
    %4 = vector.load %arg4[%c0_4, %c0_5] : memref<1x1xf32, #tpu.memory_space<vmem>>, vector<1x1xf32>
    %5 = vector.broadcast %4 : vector<1x1xf32> to vector<1x256xf32>
    %6 = arith.addf %3, %5 : vector<1x256xf32>
    %c0_6 = arith.constant 0 : index
    %c0_7 = arith.constant 0 : index
    %c0_8 = arith.constant 0 : index
    %7 = vector.load %arg5[%c0_6, %c0_7, %c0_8] : memref<1x1x256xf32, #tpu.memory_space<vmem>>, vector<1x1x256xf32>
    %8 = vector.shape_cast %7 : vector<1x1x256xf32> to vector<1x256xf32>
    %9 = vector.shape_cast %6 : vector<1x256xf32> to vector<1x1x256xf32>
    tpu.vector_store %arg5[%c0_6, %c0_7, %c0_8], %9 {strides = array<i32>} : memref<1x1x256xf32, #tpu.memory_space<vmem>>, vector<1x1x256xf32>,
    return
  }
  func.func @transform_0(%arg0: i32, %arg1: i32) -> (i32, i32, i32) {
    %c0_i32 = arith.constant 0 : i32
    %c0_i32_0 = arith.constant 0 : i32
    return %arg0, %arg1, %c0_i32 : i32, i32, i32
  }
  func.func @transform_1(%arg0: i32, %arg1: i32) -> (i32, i32) {
    %c0_i32 = arith.constant 0 : i32
    %c0_i32_0 = arith.constant 0 : i32
    %c0_i32_1 = arith.constant 0 : i32
    return %c0_i32, %c0_i32_0 : i32, i32
  }
  func.func @transform_2(%arg0: i32, %arg1: i32) -> (i32, i32) {
    %c0_i32 = arith.constant 0 : i32
    %c0_i32_0 = arith.constant 0 : i32
    %c0_i32_1 = arith.constant 0 : i32
    return %c0_i32, %c0_i32_0 : i32, i32
  }
  func.func @transform_3(%arg0: i32, %arg1: i32) -> (i32, i32, i32) {
    %c0_i32 = arith.constant 0 : i32
    %c0_i32_0 = arith.constant 0 : i32
    return %arg0, %c0_i32, %arg1 : i32, i32, i32
  }
}

</mosaic_0001>

<bundles_post_ra>
// kernel: tpu_custom_call.1
= control target key start
LH: loop header
LB: loop body
LE: loop exit
PB: predicated region body
PF: predicated region fallthrough
CT: control target
= control target key end

     0   :  { %s1019_s0 = inlined_call_operand.vmem [shape: f32[2,256,32], index: 0, kind: input, shape index: {}]   ;;  %s1020_s1 = inlined_call_operand.vmem [shape: f32[1,32], index: 1, kind: input, shape index: {}]   ;;  %s1021_s2 = inlined_call_operand.<no memory space> [shape: f32[1,1], index: 2, kind: input, shape index: {}]   ;;  %s1022_s3 = inlined_call_operand.hbm [shape: f32[2,1,256], index: 3, kind: output, shape index: {}]  }
   0x1   :  { %v8_v0 = vstv %s1021_s2 }
   0x2   :  { %9 = vst [vmem:[#allocation2] sm:$0x1] %v8_v0 }
   0x3   :  { %10 = vsyncpa [#allocation4], 0 }
   0x4   :  { %12 = vsyncpa [#allocation4 + $0x1], 0  ;;  %s826_s14 = smov 0   ;;  %s828_s15 = smov 0  }
   0x5   :  { %s830_s16 = smov 0   ;;  %s832_s17 = smov 0  }
   0x6   :  { %s834_s18 = smov 0   ;;  %s836_s19 = smov 0  }
   0x7 LB: > { %s532_s2 = sadd.s32 4294967295, %s798_s19   ;;  %s533_s20 = sadd.s32 4294967294, %s798_s19   ;;  %s798_s19 = sphi %s836_s19, %s18_s19   ;;  %s794_s18 = sphi %s834_s18, %s1031_s18   ;;  %s790_s17 = sphi %s832_s17, %s1030_s17   ;;  %s786_s16 = sphi %s830_s16, %s1029_s16   ;;  %s782_s15 = sphi %s828_s15, %s1028_s15   ;;  %s778_s14 = sphi %s826_s14, %s1027_s14  }
   0x8   : > { %s30_s21 = sadd.s32 1, %s794_s18  ;;  %s109_s22 = sadd.s32 1, %s786_s16 }
   0x9   : > { %p32_p0 = scmp.ge.s32.totalorder %s30_s21, 2  ;;  %p119_p1 = scmp.ne.s32.totalorder %s786_s16, %s782_s15 }
   0xa   : > { %p120_p2 = scmp.eq.s32.totalorder %s532_s2, 1  ;;  %p125_p3 = scmp.ne.s32.totalorder %s782_s15, %s778_s14 }
   0xb   : > { %s1033_s21 = smov (%p32_p0, %s30_s21), 0  ;;  %p126_p5 = scmp.eq.s32.totalorder %s533_s20, 1 }
   0xc   : > { %p866_p4 = por %p120_p2, %p119_p1  ;;  %s104_s24 = ssub.s32 %s794_s18, %s1033_s21 }
   0xd   : > { %p536_p6 = scmp.ge.s32.totalorder %s798_s19, 1  ;;  %p107_p7 = scmp.eq.s32.totalorder %s104_s24, 0 }
   0xe   : > { %p873_p8 = por %p126_p5, %p125_p3  ;;  %p163_p9 = scmp.lt.s32.totalorder %s798_s19, 3 }
   0xf   : > { %s879_s26 = scalar_select %p107_p7, %s786_s16, %s109_s22  }
  0x10   : > { %p164_p10 = pnand %p536_p6, %p163_p9 }
  0x11   : > { %p192_p11 = scmp.lt.s32.totalorder (!%p164_p10), %s790_s17, 1  ;;  %vm245_vm0 = vcmask (!%p164_p10), 261120   ;;  %v885_v1 = vld [vmem:[%s1020_s1] sm:$0x1] (!%p164_p10)  ;;  %v800_v2 = vmov (!%p164_p10), 0   ;;  %v241_v53 = vlaneseq (!%p164_p10)  ;;  %s188_s7 = sand.u32 (!%p164_p10), 1, %s782_s15  }
  0x12   : > { %167 = sbr.rel (%p164_p10) target bundleno = 331 (0x14b), region = 32  ;;  %612 = vmatprep.mubr.msk.f32.mxu0 (!%p164_p10), %vm245_vm0, %v885_v1  ;;  %719 = vset.pattern.permute.xlu0 (!%p164_p10), %v800_v2  ;;  %v235_v3 = vld [vmem:[#allocation2] sm:$0x1] (!%p164_p10)  ;;  %vm897_vm1 = vmpackc.low (!%p164_p10), %vm245_vm0, %vm245_vm0  ;;  %v801_v57 = vmov (!%p164_p10), 1966171168   ;;  %s537_s8 = sshll.u32 (!%p164_p10), %s188_s7, 1 }
  0x13   : > { %238 = vperm.xlu0 (!%p164_p10), %719, %v235_v3   ;;  %v242_v54 = vshrl.u32 (!%p164_p10), %v241_v53, 7  ;;  %v420_v58 = vunpack.c.l.s4 (!%p164_p10), %v801_v57  ;;  %s579_s9 = sshll.u32 (!%p164_p10), %s790_s17, 5  ;;  %s190_s10 = scalar_lea.vmem (!%p164_p10), [#allocation3], %s537_s8  ;;  %vm436_vm2 = vcmp.lt.s32.totalorder (!%p164_p10), %v241_v53, 256 }
  0x14   : > { %s456_s11 = sshll.u32 (!%p164_p10), %s190_s10, 4  ;;  %s972_s2 = scalar_lea.hbm (!%p164_p10), %s1022_s3, %s579_s9  ;;  %s974_s11 = int_to_ptr.vmem [resolvable:$true] %s456_s11 }
  0x15   : > { %v243_v55 = vsub.s32 (!%p164_p10), 0, %v242_v54  ;;  %v421_v60 = vunpack.c.0.s8 (!%p164_p10), %v420_v58  ;;  %s440_s20 = scalar_lea.sflag (!%p164_p10), [#allocation4], %s188_s7  ;;  %s720_s22 = scalar_lea.vmem (!%p164_p10), %s974_s11, 32 }
  0x16   : > { %p721_p12 = scmp.ne.s32.totalorder (!%p164_p10), %s974_s11, %s720_s22 }
  0x17   : > { %v424_v2 = vsub.s32 (!%p164_p10), %v421_v60, %v242_v54 }
  0x18   : > { %p722_p13 = pnand (!%p164_p10), %p721_p12, %p866_p4 }
  0x19   : > { %s193_s29 = scalar_select %p192_p11, %s790_s17, 1 }
  0x1a   : > { %p723_p0 = pneg %p722_p13  ;;  %s802_s17 = smov [#allocation3]  }
  0x1b   : > { %s578_s30 = sshll.u32 %s193_s29, 8  ;;  %s724_s24 = sshll.u32 %s802_s17, 4  ;;  %s725_s24 = int_to_ptr.vmem [resolvable:$false] %s724_s24 }
  0x1c   : > { %s893_s6 = scalar_lea.vmem %s1019_s0, %s578_s30  ;;  %s726_s27 = scalar_lea.vmem %s725_s24, 64 }
  0x1d   : > { %v219_v5 = vld [vmem:[%s893_s6 + $0x80] sm:$0xff]  ;;  %v220_v6 = vld [vmem:[%s893_s6 + $0x88] sm:$0xff]  ;;  %v221_v10 = vld [vmem:[%s893_s6 + $0x90] sm:$0xff]  ;;  %p727_p1 = scmp.lt.s32.totalorder %s974_s11, %s725_s24  ;;  %p728_p2 = scmp.lt.s32.totalorder %s726_s27, %s720_s22 }
  0x1e   : > { %v203_v7 = vld [vmem:[%s893_s6] sm:$0xff]  ;;  %v614_v8 = vpack.c.bf16 %v220_v6, %v219_v5  ;;  %v204_v9 = vld [vmem:[%s893_s6 + $0x8] sm:$0xff]  ;;  %v222_v11 = vld [vmem:[%s893_s6 + $0x98] sm:$0xff] }
  0x1f   : > { %v617_v12 = vpack.c.bf16 %v204_v9, %v203_v7  ;;  %v620_v13 = vpack.c.bf16 %v222_v11, %v221_v10  ;;  %v205_v14 = vld [vmem:[%s893_s6 + $0x10] sm:$0xff]  ;;  %v206_v15 = vld [vmem:[%s893_s6 + $0x18] sm:$0xff]  ;;  %v223_v16 = vld [vmem:[%s893_s6 + $0xa0] sm:$0xff]  ;;  %p729_p3 = por %p728_p2, %p727_p1 }
  0x20   : > { %616 = vmatprep.subr.msk.bf16.mxu0 %vm897_vm1, %v614_v8  ;;  %v224_v17 = vld [vmem:[%s893_s6 + $0xa8] sm:$0xff]  ;;  %v623_v18 = vpack.c.bf16 %v206_v15, %v205_v14  ;;  %v207_v20 = vld [vmem:[%s893_s6 + $0x20] sm:$0xff]  ;;  %v225_v22 = vld [vmem:[%s893_s6 + $0xb0] sm:$0xff] }
  0x21   : > { %619 = vmatpush3.bf16.xpose.msk.msra.mxu0 %vm897_vm1, %v617_v12  ;;  %v626_v19 = vpack.c.bf16 %v224_v17, %v223_v16  ;;  %v208_v21 = vld [vmem:[%s893_s6 + $0x28] sm:$0xff]  ;;  %v226_v23 = vld [vmem:[%s893_s6 + $0xb8] sm:$0xff]  ;;  %v209_v26 = vld [vmem:[%s893_s6 + $0x30] sm:$0xff]  ;;  %p730_p5 = pnand %p729_p3, %p723_p0 }
  0x22   : > { %622 = vmatprep.subr.msk.bf16.mxu0 %vm897_vm1, %v620_v13  ;;  %v629_v24 = vpack.c.bf16 %v208_v21, %v207_v20  ;;  %v632_v25 = vpack.c.bf16 %v226_v23, %v225_v22  ;;  %v210_v27 = vld [vmem:[%s893_s6 + $0x38] sm:$0xff]  ;;  %v227_v28 = vld [vmem:[%s893_s6 + $0xc0] sm:$0xff]  ;;  %v228_v29 = vld [vmem:[%s893_s6 + $0xc8] sm:$0xff] }
  0x23   : > { %v635_v30 = vpack.c.bf16 %v210_v27, %v209_v26  ;;  %v638_v31 = vpack.c.bf16 %v228_v29, %v227_v28  ;;  %v211_v32 = vld [vmem:[%s893_s6 + $0x40] sm:$0xff]  ;;  %v212_v33 = vld [vmem:[%s893_s6 + $0x48] sm:$0xff]  ;;  %v229_v34 = vld [vmem:[%s893_s6 + $0xd0] sm:$0xff] }
  0x24   : > { %v230_v35 = vld [vmem:[%s893_s6 + $0xd8] sm:$0xff]  ;;  %v641_v36 = vpack.c.bf16 %v212_v33, %v211_v32  ;;  %v213_v38 = vld [vmem:[%s893_s6 + $0x50] sm:$0xff]  ;;  %v231_v40 = vld [vmem:[%s893_s6 + $0xe0] sm:$0xff] }
  0x25   : > { %v644_v37 = vpack.c.bf16 %v230_v35, %v229_v34  ;;  %v214_v39 = vld [vmem:[%s893_s6 + $0x58] sm:$0xff]  ;;  %v232_v41 = vld [vmem:[%s893_s6 + $0xe8] sm:$0xff]  ;;  %v215_v44 = vld [vmem:[%s893_s6 + $0x60] sm:$0xff] }
  0x26   : > { %v647_v42 = vpack.c.bf16 %v214_v39, %v213_v38  ;;  %v650_v43 = vpack.c.bf16 %v232_v41, %v231_v40  ;;  %v216_v45 = vld [vmem:[%s893_s6 + $0x68] sm:$0xff]  ;;  %v233_v46 = vld [vmem:[%s893_s6 + $0xf0] sm:$0xff]  ;;  %v234_v47 = vld [vmem:[%s893_s6 + $0xf8] sm:$0xff] }
  0x27   : > { %v653_v48 = vpack.c.bf16 %v216_v45, %v215_v44  ;;  %v656_v49 = vpack.c.bf16 %v234_v47, %v233_v46  ;;  %v217_v50 = vld [vmem:[%s893_s6 + $0x70] sm:$0xff]  ;;  %v218_v51 = vld [vmem:[%s893_s6 + $0x78] sm:$0xff] }
  0x28   : > { %v659_v52 = vpack.c.bf16 %v218_v51, %v217_v50 }
  0x29   : > { %625 = vmatpush3.bf16.xpose.msk.msra.mxu0 %vm897_vm1, %v623_v18 }
  0x2a   : > { %628 = vmatprep.subr.msk.bf16.mxu0 %vm897_vm1, %v626_v19 }
  0x31   : > { %631 = vmatpush3.bf16.xpose.msk.msra.mxu0 %vm897_vm1, %v629_v24 }
  0x32   : > { %634 = vmatprep.subr.msk.bf16.mxu0 %vm897_vm1, %v632_v25 }
  0x39   : > { %637 = vmatpush3.bf16.xpose.msk.msra.mxu0 %vm897_vm1, %v635_v30 }
  0x3a   : > { %640 = vmatprep.subr.msk.bf16.mxu0 %vm897_vm1, %v638_v31 }
  0x41   : > { %643 = vmatpush3.bf16.xpose.msk.msra.mxu0 %vm897_vm1, %v641_v36 }
  0x42   : > { %646 = vmatprep.subr.msk.bf16.mxu0 %vm897_vm1, %v644_v37 }
  0x49   : > { %649 = vmatpush3.bf16.xpose.msk.msra.mxu0 %vm897_vm1, %v647_v42 }
  0x4a   : > { %652 = vmatprep.subr.msk.bf16.mxu0 %vm897_vm1, %v650_v43 }
  0x51   : > { %655 = vmatpush3.bf16.xpose.msk.msra.mxu0 %vm897_vm1, %v653_v48 }
  0x52   : > { %658 = vmatprep.subr.msk.bf16.mxu0 %vm897_vm1, %v656_v49 }
  0x59   : > { %661 = vmatpush3.bf16.xpose.msk.msra.mxu0 %vm897_vm1, %v659_v52 }
  0x60   : > { %613 = vmatmul.mubr.msk.f32.vlgmr.msra.gmra.mrb[0].mxu0 %vm245_vm0, %v885_v1 }
  0x92   : > { %v239_v56 = vpop.permute.xlu0 %238 }
  0x93   : > { %v244_v59 = vrot.slane %v239_v56, %v243_v55 }
 0x133   : > { %v411_v61 = vpop.f32.mrb[0].mxu0 }
 0x134   : > { %v412_v62 = vadd.f32 %v411_v61, %v244_v59  ;;  %v413_v63 = vpop.f32.mrb[1].mxu0 }
 0x135   : > { %v414_v0 = vadd.f32 %v413_v63, %v244_v59 }
 0x137   : > { %v418_v3 = vcombine.low %v412_v62, %v414_v0 }
 0x139   : > { %v425_v1 = vrot.slane %v418_v3, %v424_v2 }
 0x13b   : > { %v432_v4 = vrot.slane %v425_v1, %v424_v2 }
 0x13d   : > { %438 = vst.msk [vmem:[%s190_s10] sm:$0x3] %vm436_vm2, %v432_v4 }
 0x13e   : > { %733 = shalt.err (!%p730_p5)
}
 0x13f   : > { %s734_s28 = scalar_lea.hbm %s972_s2, 32  ;;  %s738_s4 = scalar_lea.hbm %s1022_s3, 64 }
 0x140   : > { %p735_p6 = scmp.ne.s32.totalorder %s972_s2, %s734_s28  ;;  %p739_p10 = scmp.lt.u32.totalorder %s972_s2, %s1022_s3 }
 0x141   : > { %p740_p11 = scmp.lt.u32.totalorder %s738_s4, %s734_s28  ;;  %p742_p13 = scmp.lt.u32.totalorder %s734_s28, %s972_s2 }
 0x142   : > { %p736_p7 = pnand %p735_p6, %p866_p4 }
 0x143   : > { %p741_p12 = por %p740_p11, %p739_p10 }
 0x144   : > { %p737_p9 = pneg %p736_p7 }
 0x145   : > { %p743_p0 = por %p742_p13, %p741_p12 }
 0x147   : > { %p744_p1 = pnand %p743_p0, %p737_p9 }
 0x149   : > { %747 = shalt.err (!%p744_p1)
}
 0x14a   : > { %662 = dma.vmem_to_hbm [thread:$0]  (%p866_p4), %s974_s11, 32, %s972_s2, %s440_s20  }
 0x14b PF: > { %p668_p2 = scmp.ge.s32.totalorder %s798_s19, 2  ;;  %s468_s7 = sand.u32 1, %s778_s14  }
 0x14c   : > { %s469_s8 = scalar_lea.sflag [#allocation4], %s468_s7 }
 0x14d   : > { %p665_p3 = pnand %p668_p2, %p873_p8 }
 0x14f   : > { %773 = dma.done.wait (!%p665_p3), %s469_s8, 32  }
 0x150   : > { %775 = vsyncadd (!%p665_p3), %s469_s8, 4294967264  ;;  %s18_s19 = sadd.s32 1, %s798_s19   ;;  %s1027_s14 = smov %s782_s15 }
 0x151   : > { %p15_p5 = scmp.ge.s32.totalorder %s18_s19, 4   ;;  %s1028_s15 = smov %s786_s16 }
 0x152   : > { %s1029_s16 = smov %s879_s26  ;;  %s1030_s17 = smov %s794_s18 }
 0x153   : > { %s1031_s18 = smov %s1033_s21  ;;  %17 = sbr.rel (!%p15_p5) target bundleno = 7 (0x7), region = 67 }
 0x15a   :  { %474 = vsyncpa [#allocation4], 1 }
 0x15b   :  { %476 = vsyncpa [#allocation4 + $0x1], 1 }

</bundles_post_ra>
